<compile_context>
chip_gen: v7x
topology: tpu7x:2x2x1
jax: 0.10.0
libtpu: 0.0.40
codegen_flags: <defaults>
</compile_context>

<pallas_src>
import jax
import jax.numpy as jnp
from jax.experimental import pallas as pl
from jax.experimental.pallas import tpu as pltpu


_LANE = 128
_SUBLANE = 8
_NEG_BIG = -1e30  # bias for padded (fake) output classes: exp() underflows to 0


def _round_up(n, m):
    return ((n + m - 1) // m) * m


def _mlp_logsoftmax_kernel(x_ref, w0_ref, b0_ref, w1_ref, b1_ref, o_ref):
    """(x @ W0 + b0) -> ReLU -> (@ W1 + b1) -> log_softmax(axis=-1).

    x arrives as f32 (no wrapper-side copy) and is cast to bf16 right before
    the MXU; both matmuls accumulate in f32.  Padded output lanes carry a
    -1e30 bias so they vanish from the softmax denominator.
    """
    # fc0 + ReLU  (nn.Dropout is identity at inference time -> no-op).
    x = x_ref[...].astype(jnp.bfloat16)
    h = jnp.dot(x, w0_ref[...], preferred_element_type=jnp.float32)
    h = jnp.maximum(h + b0_ref[...], 0.0)

    # fc1 (final linear).  w1's padded columns are zero, b1's padded lanes are
    # -1e30, so fake classes contribute exactly 0 to the softmax denominator.
    logits = jnp.dot(h.astype(jnp.bfloat16), w1_ref[...],
                     preferred_element_type=jnp.float32) + b1_ref[...]

    # Numerically stable log-softmax over the (lane-dense, padded) last axis.
    m = jnp.max(logits, axis=-1, keepdims=True)
    z = logits - m
    lse = jnp.log(jnp.sum(jnp.exp(z), axis=-1, keepdims=True))
    o_ref[...] = (z - lse).astype(o_ref.dtype)


def _pick_batch_tile(b_rows, in_p):
    """Rows per grid step for the batch axis."""
    # Keep double-buffered f32 x tiles under ~16 MiB so the whole working set
    # (x + bf16 out + resident weights) fits the 32 MiB scoped-VMEM limit we
    # request below (safe on v5e / v6e / v7x).
    cap = (16 << 20) // (2 * in_p * 4)
    cap = max(_SUBLANE, min(2048, (cap // _SUBLANE) * _SUBLANE))
    if b_rows < 2 * _SUBLANE:
        # Single block equal to the full (tiny) batch — always a legal block.
        return b_rows
    if b_rows <= cap:
        # Split into >= 2 grid steps so ("parallel",) can use both v7x cores.
        return _round_up(pl.cdiv(b_rows, 2), _SUBLANE)
    return cap


@jax.jit
def discriminator_forward(x, w0, b0, w1, b1):
    """x: (B, C, H, W) or (B, D) float32.  Weights stored transposed vs torch:
    w0 (num_input, hidden), w1 (hidden, num_output); biases 1-D.
    Returns float32 log-probabilities of shape (B, num_output)."""
    B = x.shape[0]
    x_flat = x.reshape(B, -1)            # x.view(x.size(0), -1)
    num_in = x_flat.shape[1]
    hidden = w0.shape[1]
    num_out = w1.shape[1]

    in_p = _round_up(num_in, _LANE)
    hid_p = _round_up(hidden, _LANE)
    out_p = _round_up(num_out, _LANE)

    # x is the only bandwidth-significant operand: no dtype change and no row
    # padding in the wrapper (Pallas handles a partial last block; dead rows
    # are computed and their stores dropped).  Pad columns only if needed.
    if in_p != num_in:
        x_flat = jnp.pad(x_flat, ((0, 0), (0, in_p - num_in)))

    # Tiny resident operands: pad once, pre-cast weights to bf16.
    w0p = jnp.pad(w0, ((0, in_p - num_in), (0, hid_p - hidden))).astype(jnp.bfloat16)
    b0p = jnp.pad(b0.reshape(1, hidden), ((0, 0), (0, hid_p - hidden)))
    w1p = jnp.pad(w1, ((0, hid_p - hidden), (0, out_p - num_out))).astype(jnp.bfloat16)
    b1p = jnp.pad(b1.reshape(1, num_out), ((0, 0), (0, out_p - num_out)),
                  constant_values=_NEG_BIG)

    tb = _pick_batch_tile(B, in_p)
    grid = (pl.cdiv(B, tb),)

    cost = pl.CostEstimate(
        flops=2 * B * in_p * hid_p + 2 * B * hid_p * out_p,
        transcendentals=B * out_p + B,
        bytes_accessed=(B * in_p * 4            # x read as f32
                        + w0p.size * 2 + b0p.size * 4
                        + w1p.size * 2 + b1p.size * 4
                        + B * out_p * 2),       # bf16 writeback
    )

    out = pl.pallas_call(
        _mlp_logsoftmax_kernel,
        out_shape=jax.ShapeDtypeStruct((B, out_p), jnp.bfloat16),
        grid=grid,
        in_specs=[
            pl.BlockSpec((tb, in_p), lambda i: (i, 0)),       # x: tiled over batch
            pl.BlockSpec((in_p, hid_p), lambda i: (0, 0)),    # w0: resident (bf16)
            pl.BlockSpec((1, hid_p), lambda i: (0, 0)),       # b0: resident
            pl.BlockSpec((hid_p, out_p), lambda i: (0, 0)),   # w1: resident (bf16)
            pl.BlockSpec((1, out_p), lambda i: (0, 0)),       # b1: resident
        ],
        out_specs=pl.BlockSpec((tb, out_p), lambda i: (i, 0)),  # lane-dense output
        compiler_params=pltpu.CompilerParams(
            dimension_semantics=("parallel",),
            vmem_limit_bytes=32 * 1024 * 1024),
        cost_estimate=cost,
    )(x_flat, w0p, b0p, w1p, b1p)

    return out[:, :num_out].astype(jnp.float32)


def init_linear_params(key, in_features, out_features):
    """PyTorch-style init U(-1/sqrt(in), 1/sqrt(in)); weight is (in, out)."""
    k_w, k_b = jax.random.split(key)
    bound = 1.0 / (in_features ** 0.5)
    w = jax.random.uniform(k_w, (in_features, out_features),
                           minval=-bound, maxval=bound, dtype=jnp.float32)
    b = jax.random.uniform(k_b, (out_features,),
                           minval=-bound, maxval=bound, dtype=jnp.float32)
    return w, b


def reference_forward(x, w0, b0, w1, b1):
    """Pure-JAX f32 reference of the PyTorch forward (eval mode)."""
    xf = x.reshape(x.shape[0], -1)
    h = jnp.maximum(xf @ w0 + b0, 0.0)
    logits = h @ w1 + b1
    return jax.nn.log_softmax(logits, axis=-1)


if __name__ == "__main__":
    # Discriminator(input_shape=(B, C, H, W), num_output=8, hiddens=[32])
    B, C, H, W = 2, 4, 16, 16
    num_input = C * H * W            # 1024
    hidden = 32
    num_output = 8

    key = jax.random.PRNGKey(0)
    k_x, k_fc0, k_fc1 = jax.random.split(key, 3)

    x = jax.random.normal(k_x, (B, C, H, W), dtype=jnp.float32)
    w0, b0 = init_linear_params(k_fc0, num_input, hidden)
    w1, b1 = init_linear_params(k_fc1, hidden, num_output)

    out = discriminator_forward(x, w0, b0, w1, b1)
    out = jax.block_until_ready(out)

    assert out.shape == (B, num_output)
    # Check vs full-precision reference (kernel uses bf16 MXU inputs and bf16
    # writeback, so tolerance is set accordingly).
    ref = reference_forward(x, w0, b0, w1, b1)
    assert jnp.allclose(out, ref, atol=5e-2, rtol=0.0), "mismatch vs f32 reference"
    # log-softmax rows should sum to ~1 in probability space (bf16 writeback
    # loosens this to ~1e-2).
    assert jnp.allclose(jnp.sum(jnp.exp(out), axis=-1), 1.0, atol=2e-2)

    print("KERNEL_OK")
</pallas_src>

<mosaic_0001>
module attributes {stable_mosaic.version = 11 : i64} {
  func.func @_mlp_logsoftmax_kernel(%arg0: i32, %arg1: memref<2x1024xf32, #tpu.memory_space<vmem>>, %arg2: memref<1024x128xbf16, #tpu.memory_space<vmem>>, %arg3: memref<1x128xf32, #tpu.memory_space<vmem>>, %arg4: memref<128x128xbf16, #tpu.memory_space<vmem>>, %arg5: memref<1x128xf32, #tpu.memory_space<vmem>>, %arg6: memref<2x128xbf16, #tpu.memory_space<vmem>>) attributes {dimension_semantics = [#tpu.dimension_semantics<parallel>], iteration_bounds = array<i64: 1>, scalar_prefetch = 0 : i64, scratch_operands = 0 : i64, tpu.core_type = #tpu.core_type<tc>, window_params = [{transform_indices = @transform_0, window_bounds = array<i64: 2, 1024>}, {pipeline_mode = #tpu.pipeline_mode<synchronous>, transform_indices = @transform_1, window_bounds = array<i64: 1024, 128>}, {pipeline_mode = #tpu.pipeline_mode<synchronous>, transform_indices = @transform_2, window_bounds = array<i64: 1, 128>}, {pipeline_mode = #tpu.pipeline_mode<synchronous>, transform_indices = @transform_3, window_bounds = array<i64: 128, 128>}, {pipeline_mode = #tpu.pipeline_mode<synchronous>, transform_indices = @transform_4, window_bounds = array<i64: 1, 128>}, {transform_indices = @transform_5, window_bounds = array<i64: 2, 128>}]} {
    %c0 = arith.constant 0 : index
    %c0_0 = arith.constant 0 : index
    %0 = vector.load %arg1[%c0, %c0_0] : memref<2x1024xf32, #tpu.memory_space<vmem>>, vector<2x1024xf32>
    %1 = arith.truncf %0 : vector<2x1024xf32> to vector<2x1024xbf16>
    %c0_1 = arith.constant 0 : index
    %c0_2 = arith.constant 0 : index
    %2 = vector.load %arg2[%c0_1, %c0_2] : memref<1024x128xbf16, #tpu.memory_space<vmem>>, vector<1024x128xbf16>
    %cst = arith.constant dense<0.000000e+00> : vector<2x128xf32>
    %3 = tpu.matmul %1, %2, %cst {dimension_numbers = #tpu.dot_dimension_numbers<[1], [0], [0], [1], [0, 0, 1, 1], [], []>} : vector<2x1024xbf16>, vector<1024x128xbf16>, vector<2x128xf32> -> vector<2x128xf32>
    %c0_3 = arith.constant 0 : index
    %c0_4 = arith.constant 0 : index
    %4 = vector.load %arg3[%c0_3, %c0_4] : memref<1x128xf32, #tpu.memory_space<vmem>>, vector<1x128xf32>
    %5 = vector.broadcast %4 : vector<1x128xf32> to vector<2x128xf32>
    %6 = arith.addf %3, %5 : vector<2x128xf32>
    %cst_5 = arith.constant 0.000000e+00 : f32
    %7 = vector.broadcast %cst_5 : f32 to vector<2x128xf32>
    %8 = arith.maximumf %6, %7 : vector<2x128xf32>
    %9 = arith.truncf %8 : vector<2x128xf32> to vector<2x128xbf16>
    %c0_6 = arith.constant 0 : index
    %c0_7 = arith.constant 0 : index
    %10 = vector.load %arg4[%c0_6, %c0_7] : memref<128x128xbf16, #tpu.memory_space<vmem>>, vector<128x128xbf16>
    %cst_8 = arith.constant dense<0.000000e+00> : vector<2x128xf32>
    %11 = tpu.matmul %9, %10, %cst_8 {dimension_numbers = #tpu.dot_dimension_numbers<[1], [0], [0], [1], [0, 0, 1, 1], [], []>} : vector<2x128xbf16>, vector<128x128xbf16>, vector<2x128xf32> -> vector<2x128xf32>
    %c0_9 = arith.constant 0 : index
    %c0_10 = arith.constant 0 : index
    %12 = vector.load %arg5[%c0_9, %c0_10] : memref<1x128xf32, #tpu.memory_space<vmem>>, vector<1x128xf32>
    %13 = vector.broadcast %12 : vector<1x128xf32> to vector<2x128xf32>
    %14 = arith.addf %11, %13 : vector<2x128xf32>
    %cst_11 = arith.constant dense<0xFF800000> : vector<2xf32>
    %15 = vector.multi_reduction <maximumf>, %14, %cst_11 [1] : vector<2x128xf32> to vector<2xf32>
    %16 = vector.shape_cast %15 : vector<2xf32> to vector<2x1xf32>
    %17 = vector.broadcast %16 : vector<2x1xf32> to vector<2x128xf32>
    %18 = arith.subf %14, %17 : vector<2x128xf32>
    %19 = math.exp %18 : vector<2x128xf32>
    %cst_12 = arith.constant dense<0.000000e+00> : vector<2xf32>
    %20 = vector.multi_reduction <add>, %19, %cst_12 [1] : vector<2x128xf32> to vector<2xf32>
    %21 = vector.shape_cast %20 : vector<2xf32> to vector<2x1xf32>
    %22 = math.log %21 : vector<2x1xf32>
    %23 = vector.broadcast %22 : vector<2x1xf32> to vector<2x128xf32>
    %24 = arith.subf %18, %23 : vector<2x128xf32>
    %25 = arith.truncf %24 : vector<2x128xf32> to vector<2x128xbf16>
    %c0_13 = arith.constant 0 : index
    %c0_14 = arith.constant 0 : index
    %26 = vector.load %arg6[%c0_13, %c0_14] : memref<2x128xbf16, #tpu.memory_space<vmem>>, vector<2x128xbf16>
    tpu.vector_store %arg6[%c0_13, %c0_14], %25 {strides = array<i32>} : memref<2x128xbf16, #tpu.memory_space<vmem>>, vector<2x128xbf16>,
    return
  }
  func.func @transform_0(%arg0: i32) -> (i32, i32) {
    %c0_i32 = arith.constant 0 : i32
    %c0_i32_0 = arith.constant 0 : i32
    return %arg0, %c0_i32 : i32, i32
  }
  func.func @transform_1(%arg0: i32) -> (i32, i32) {
    %c0_i32 = arith.constant 0 : i32
    %c0_i32_0 = arith.constant 0 : i32
    %c0_i32_1 = arith.constant 0 : i32
    return %c0_i32, %c0_i32_0 : i32, i32
  }
  func.func @transform_2(%arg0: i32) -> (i32, i32) {
    %c0_i32 = arith.constant 0 : i32
    %c0_i32_0 = arith.constant 0 : i32
    %c0_i32_1 = arith.constant 0 : i32
    return %c0_i32, %c0_i32_0 : i32, i32
  }
  func.func @transform_3(%arg0: i32) -> (i32, i32) {
    %c0_i32 = arith.constant 0 : i32
    %c0_i32_0 = arith.constant 0 : i32
    %c0_i32_1 = arith.constant 0 : i32
    return %c0_i32, %c0_i32_0 : i32, i32
  }
  func.func @transform_4(%arg0: i32) -> (i32, i32) {
    %c0_i32 = arith.constant 0 : i32
    %c0_i32_0 = arith.constant 0 : i32
    %c0_i32_1 = arith.constant 0 : i32
    return %c0_i32, %c0_i32_0 : i32, i32
  }
  func.func @transform_5(%arg0: i32) -> (i32, i32) {
    %c0_i32 = arith.constant 0 : i32
    %c0_i32_0 = arith.constant 0 : i32
    return %arg0, %c0_i32 : i32, i32
  }
}

</mosaic_0001>

<bundles_post_ra>
// kernel: discriminator_forward.1
= control target key start
LH: loop header
LB: loop body
LE: loop exit
PB: predicated region body
PF: predicated region fallthrough
CT: control target
= control target key end

     0   :  { %v1158_v22 = vmov 1983009808   ;;  %v29_v24 = vlaneseq  ;;  %vm1160_vm0 = vmmov 0   ;;  %vm867_vm1 = vcmask 1041408   ;;  %s1434_s1 = inlined_call_operand.vmem [shape: bf16[1024,128], index: 1, kind: input, shape index: {}]   ;;  %s1435_s0 = inlined_call_operand.vmem [shape: f32[2,1024], index: 0, kind: input, shape index: {}]   ;;  %s1436_s3 = inlined_call_operand.vmem [shape: bf16[128,128], index: 3, kind: input, shape index: {}]   ;;  %s1437_s2 = inlined_call_operand.vmem [shape: f32[1,128], index: 2, kind: input, shape index: {}]   ;;  %s1438_s4 = inlined_call_operand.vmem [shape: f32[1,128], index: 4, kind: input, shape index: {}]   ;;  %s1439_s5 = inlined_call_operand.vmem [shape: bf16[2,128], index: 5, kind: output, shape index: {}]  }
   0x1   :  { %v1080_v0 = vld [vmem:[%s1434_s1 + $0x40] sm:$0xff]   ;;  %v1084_v4 = vld [vmem:[%s1434_s1 + $0x48] sm:$0xff]   ;;  %v1088_v8 = vld [vmem:[%s1434_s1 + $0x50] sm:$0xff]   ;;  %v27_v23 = vunpack.c.l.s4 %v1158_v22 }
   0x2   :  { %v1081_v1 = vld [vmem:[%s1434_s1 + $0xc0] sm:$0xff]   ;;  %960 = vmatprep.subr.bf16.mxu0 %v1080_v0  ;;  %v1085_v5 = vld [vmem:[%s1434_s1 + $0xc8] sm:$0xff]   ;;  %v1089_v9 = vld [vmem:[%s1434_s1 + $0xd0] sm:$0xff]   ;;  %v30_v30 = vshrl.u32 %v29_v24, 7 }
   0x3   :  { %v1082_v2 = vld [vmem:[%s1434_s1] sm:$0xff]   ;;  %982 = vmatprep.subr.bf16.mxu1 %v1081_v1  ;;  %v1086_v6 = vld [vmem:[%s1434_s1 + $0x8] sm:$0xff]   ;;  %v1090_v10 = vld [vmem:[%s1434_s1 + $0x10] sm:$0xff]   ;;  %v28_v29 = vunpack.c.0.s8 %v27_v23 }
   0x4   :  { %v1083_v3 = vld [vmem:[%s1434_s1 + $0x80] sm:$0xff]   ;;  %961 = vmatpush3.bf16.msra.mxu0 %v1082_v2  ;;  %v1087_v7 = vld [vmem:[%s1434_s1 + $0x88] sm:$0xff]   ;;  %v1091_v11 = vld [vmem:[%s1434_s1 + $0x90] sm:$0xff]  }
   0x5   :  { %983 = vmatpush3.bf16.msra.mxu1 %v1083_v3  ;;  %962 = vmatprep.subr.bf16.mxu0 %v1084_v4  ;;  %v1092_v12 = vld [vmem:[%s1434_s1 + $0x58] sm:$0xff]   ;;  %v1096_v16 = vld [vmem:[%s1434_s1 + $0x60] sm:$0xff]   ;;  %v1100_v20 = vld [vmem:[%s1434_s1 + $0x68] sm:$0xff]   ;;  %v31_v35 = vsub.s32 %v28_v29, %v30_v30 }
   0x6   :  { %984 = vmatprep.subr.bf16.mxu1 %v1085_v5  ;;  %v1093_v13 = vld [vmem:[%s1434_s1 + $0xd8] sm:$0xff]   ;;  %v1097_v17 = vld [vmem:[%s1434_s1 + $0xe0] sm:$0xff]   ;;  %v1101_v21 = vld [vmem:[%s1434_s1 + $0xe8] sm:$0xff]  }
   0x7   :  { %v1094_v14 = vld [vmem:[%s1434_s1 + $0x18] sm:$0xff]   ;;  %v1098_v18 = vld [vmem:[%s1434_s1 + $0x20] sm:$0xff]   ;;  %v1102_v25 = vld [vmem:[%s1434_s1 + $0x28] sm:$0xff]  }
   0x8   :  { %963 = vmatpush3.bf16.msra.mxu0 %v1086_v6  ;;  %v1095_v15 = vld [vmem:[%s1434_s1 + $0x98] sm:$0xff]   ;;  %v1099_v19 = vld [vmem:[%s1434_s1 + $0xa0] sm:$0xff]   ;;  %v1103_v26 = vld [vmem:[%s1434_s1 + $0xa8] sm:$0xff]  }
   0x9   :  { %985 = vmatpush3.bf16.msra.mxu1 %v1087_v7  ;;  %964 = vmatprep.subr.bf16.mxu0 %v1088_v8  ;;  %v1104_v27 = vld [vmem:[%s1434_s1 + $0x70] sm:$0xff]   ;;  %v1108_v33 = vld [vmem:[%s1434_s1 + $0x78] sm:$0xff]   ;;  %v21_v38 = vld [vmem:[%s1435_s0] sm:$0xff] }
   0xa   :  { %986 = vmatprep.subr.bf16.mxu1 %v1089_v9  ;;  %v1105_v28 = vld [vmem:[%s1434_s1 + $0xf0] sm:$0xff]   ;;  %v1109_v34 = vld [vmem:[%s1434_s1 + $0xf8] sm:$0xff]   ;;  %v22_v39 = vld [vmem:[%s1435_s0 + $0x8] sm:$0xff]  ;;  %v32_v40 = vrot.slane %v21_v38, %v31_v35  ;;  %v25_v42 = vcombine.high %v21_v38, %v21_v38 }
   0xb   :  { %v1106_v31 = vld [vmem:[%s1434_s1 + $0x30] sm:$0xff]   ;;  %v1110_v36 = vld [vmem:[%s1434_s1 + $0x38] sm:$0xff]   ;;  %v42_v41 = vcombine.high %v22_v39, %v22_v39  ;;  %v1114_v43 = vld [vmem:[%s1434_s1 + $0x140] sm:$0xff]   ;;  %v1296_v44 = vrot.slane %v22_v39, %v31_v35 }
   0xc   :  { %965 = vmatpush3.bf16.msra.mxu0 %v1090_v10  ;;  %v1107_v32 = vld [vmem:[%s1434_s1 + $0xb0] sm:$0xff]   ;;  %v1111_v37 = vld [vmem:[%s1434_s1 + $0xb8] sm:$0xff]   ;;  %v1115_v45 = vld [vmem:[%s1434_s1 + $0x1c0] sm:$0xff]   ;;  %v40_v46 = vcombine.high %v32_v40, %v32_v40  ;;  %v39_v47 = vrot.slane %v25_v42, %v31_v35  ;;  %v67_v49 = vpack.c.bf16 %v32_v40, %v32_v40 }
   0xd   :  { %987 = vmatpush3.bf16.msra.mxu1 %v1091_v11  ;;  %966 = vmatprep.subr.bf16.mxu0 %v1092_v12  ;;  %v57_v48 = vcombine.high %v1296_v44, %v1296_v44  ;;  %v1303_v50 = vrot.slane %v42_v41, %v31_v35  ;;  %v1116_v53 = vld [vmem:[%s1434_s1 + $0x100] sm:$0xff]   ;;  %v1118_v55 = vld [vmem:[%s1434_s1 + $0x148] sm:$0xff]   ;;  %v1122_v63 = vld [vmem:[%s1434_s1 + $0x150] sm:$0xff]   ;;  %v71_v24 = vpack.c.bf16 %v1296_v44, %v1296_v44 }
   0xe   :  { %988 = vmatprep.subr.bf16.mxu1 %v1093_v13  ;;  %v68_v51 = vpack.c.bf16 %v40_v46, %v40_v46  ;;  %v41_v52 = vcombine.high %v39_v47, %v39_v47  ;;  %v69_v54 = vpack.c.bf16 %v39_v47, %v39_v47  ;;  %v1117_v58 = vld [vmem:[%s1434_s1 + $0x180] sm:$0xff]   ;;  %v1119_v60 = vld [vmem:[%s1434_s1 + $0x1c8] sm:$0xff]   ;;  %v1123_v1 = vld [vmem:[%s1434_s1 + $0x1d0] sm:$0xff]  }
   0xf   :  { %v58_v56 = vcombine.high %v1303_v50, %v1303_v50  ;;  %v72_v59 = vpack.c.bf16 %v57_v48, %v57_v48  ;;  %v1120_v62 = vld [vmem:[%s1434_s1 + $0x108] sm:$0xff]   ;;  %v1124_v2 = vld [vmem:[%s1434_s1 + $0x110] sm:$0xff]   ;;  %v1126_v3 = vld [vmem:[%s1434_s1 + $0x158] sm:$0xff]  }
  0x10   :  { %967 = vmatpush3.bf16.msra.mxu0 %v1094_v14  ;;  %626 = vmatprep.mubr.bf16.mxu0 %v68_v51  ;;  %v70_v57 = vpack.c.bf16 %v41_v52, %v41_v52  ;;  %v1121_v0 = vld [vmem:[%s1434_s1 + $0x188] sm:$0xff]   ;;  %v1125_v4 = vld [vmem:[%s1434_s1 + $0x190] sm:$0xff]   ;;  %v1127_v5 = vld [vmem:[%s1434_s1 + $0x1d8] sm:$0xff]  }
  0x11   :  { %989 = vmatpush3.bf16.msra.mxu1 %v1095_v15  ;;  %968 = vmatprep.subr.bf16.mxu0 %v1096_v16  ;;  %v74_v61 = vpack.c.bf16 %v58_v56, %v58_v56  ;;  %v1128_v6 = vld [vmem:[%s1434_s1 + $0x118] sm:$0xff]   ;;  %v1130_v7 = vld [vmem:[%s1434_s1 + $0x160] sm:$0xff]   ;;  %v1134_v11 = vld [vmem:[%s1434_s1 + $0x168] sm:$0xff]  }
  0x12   :  { %990 = vmatprep.subr.bf16.mxu1 %v1097_v17  ;;  %666 = vmatprep.mubr.bf16.mxu1 %v70_v57  ;;  %v1129_v8 = vld [vmem:[%s1434_s1 + $0x198] sm:$0xff]   ;;  %v1131_v9 = vld [vmem:[%s1434_s1 + $0x1e0] sm:$0xff]   ;;  %v1135_v13 = vld [vmem:[%s1434_s1 + $0x1e8] sm:$0xff]  }
  0x13   :  { %v1132_v10 = vld [vmem:[%s1434_s1 + $0x120] sm:$0xff]   ;;  %v1136_v14 = vld [vmem:[%s1434_s1 + $0x128] sm:$0xff]   ;;  %v1138_v15 = vld [vmem:[%s1434_s1 + $0x170] sm:$0xff]  }
  0x14   :  { %969 = vmatpush3.bf16.msra.mxu0 %v1098_v18  ;;  %v1133_v12 = vld [vmem:[%s1434_s1 + $0x1a0] sm:$0xff]   ;;  %v1137_v16 = vld [vmem:[%s1434_s1 + $0x1a8] sm:$0xff]   ;;  %v1139_v17 = vld [vmem:[%s1434_s1 + $0x1f0] sm:$0xff]  }
  0x15   :  { %991 = vmatpush3.bf16.msra.mxu1 %v1099_v19  ;;  %970 = vmatprep.subr.bf16.mxu0 %v1100_v20  ;;  %v1140_v18 = vld [vmem:[%s1434_s1 + $0x130] sm:$0xff]   ;;  %v1142_v19 = vld [vmem:[%s1434_s1 + $0x178] sm:$0xff]  }
  0x16   :  { %992 = vmatprep.subr.bf16.mxu1 %v1101_v21  ;;  %v1141_v20 = vld [vmem:[%s1434_s1 + $0x1b0] sm:$0xff]   ;;  %v1143_v21 = vld [vmem:[%s1434_s1 + $0x1f8] sm:$0xff]  }
  0x17   :  { %v1144_v22 = vld [vmem:[%s1434_s1 + $0x138] sm:$0xff]   ;;  %v1148_v29 = vld [vmem:[%s1436_s3 + $0x10] sm:$0xff]  }
  0x18   :  { %971 = vmatpush3.bf16.msra.mxu0 %v1102_v25  ;;  %v1145_v23 = vld [vmem:[%s1434_s1 + $0x1b8] sm:$0xff]   ;;  %v73_v25 = vpack.c.bf16 %v1303_v50, %v1303_v50 }
  0x19   :  { %993 = vmatpush3.bf16.msra.mxu1 %v1103_v26  ;;  %972 = vmatprep.subr.bf16.mxu0 %v1104_v27  ;;  %v1159_v26 = vmov 0.0   ;;  %v1146_v27 = vld [vmem:[%s1436_s3] sm:$0xff]   ;;  %v1149_v30 = vld [vmem:[%s1436_s3 + $0x18] sm:$0xff]  }
  0x1a   :  { %994 = vmatprep.subr.bf16.mxu1 %v1105_v28  ;;  %v1147_v28 = vld [vmem:[%s1436_s3 + $0x8] sm:$0xff]  }
  0x1c   :  { %973 = vmatpush3.bf16.msra.mxu0 %v1106_v31  ;;  %v1150_v31 = vld [vmem:[%s1436_s3 + $0x20] sm:$0xff]  }
  0x1d   :  { %995 = vmatpush3.bf16.msra.mxu1 %v1107_v32  ;;  %974 = vmatprep.subr.bf16.mxu0 %v1108_v33  ;;  %v1151_v32 = vld [vmem:[%s1436_s3 + $0x28] sm:$0xff]   ;;  %v1152_v33 = vld [vmem:[%s1436_s3 + $0x30] sm:$0xff]  }
  0x1e   :  { %996 = vmatprep.subr.bf16.mxu1 %v1109_v34  ;;  %v1153_v34 = vld [vmem:[%s1436_s3 + $0x38] sm:$0xff]  }
  0x20   :  { %975 = vmatpush3.bf16.msra.mxu0 %v1110_v36  ;;  %v886_v36 = vld [vmem:[%s1437_s2] ss:$0 sm:$0xff] }
  0x21   :  { %997 = vmatpush3.bf16.msra.mxu1 %v1111_v37  ;;  %1004 = vmatprep.subr.bf16.mxu0 %v1114_v43 }
  0x22   :  { %1026 = vmatprep.subr.bf16.mxu1 %v1115_v45 }
  0x23   :  { %627 = vmatmul.mubr.bf16.vlgmr.msra.gmra.mrb[0].mxu0 %v67_v49 }
  0x24   :  { %1005 = vmatpush3.bf16.msra.mxu0 %v1116_v53  ;;  %667 = vmatmul.mubr.bf16.vlgmr.msra.gmra.mrb[0].mxu1 %v69_v54 }
  0x25   :  { %1006 = vmatprep.subr.bf16.mxu0 %v1118_v55  ;;  %1027 = vmatpush3.bf16.msra.mxu1 %v1117_v58 }
  0x26   :  { %706 = vmatprep.mubr.bf16.mxu0 %v72_v59  ;;  %1028 = vmatprep.subr.bf16.mxu1 %v1119_v60 }
  0x27   :  { %746 = vmatprep.mubr.bf16.mxu1 %v74_v61 }
  0x28   :  { %1007 = vmatpush3.bf16.msra.mxu0 %v1120_v62  ;;  %v951_v62 = vld [vmem:[%s1438_s4] ss:$0 sm:$0xff] }
  0x29   :  { %1008 = vmatprep.subr.bf16.mxu0 %v1122_v63  ;;  %1029 = vmatpush3.bf16.msra.mxu1 %v1121_v0 }
  0x2a   :  { %1030 = vmatprep.subr.bf16.mxu1 %v1123_v1 }
  0x2c   :  { %1009 = vmatpush3.bf16.msra.mxu0 %v1124_v2 }
  0x2d   :  { %1010 = vmatprep.subr.bf16.mxu0 %v1126_v3  ;;  %1031 = vmatpush3.bf16.msra.mxu1 %v1125_v4 }
  0x2e   :  { %1032 = vmatprep.subr.bf16.mxu1 %v1127_v5 }
  0x30   :  { %1011 = vmatpush3.bf16.msra.mxu0 %v1128_v6 }
  0x31   :  { %1012 = vmatprep.subr.bf16.mxu0 %v1130_v7  ;;  %1033 = vmatpush3.bf16.msra.mxu1 %v1129_v8 }
  0x32   :  { %1034 = vmatprep.subr.bf16.mxu1 %v1131_v9 }
  0x34   :  { %1013 = vmatpush3.bf16.msra.mxu0 %v1132_v10 }
  0x35   :  { %1014 = vmatprep.subr.bf16.mxu0 %v1134_v11  ;;  %1035 = vmatpush3.bf16.msra.mxu1 %v1133_v12 }
  0x36   :  { %1036 = vmatprep.subr.bf16.mxu1 %v1135_v13 }
  0x38   :  { %1015 = vmatpush3.bf16.msra.mxu0 %v1136_v14 }
  0x39   :  { %1016 = vmatprep.subr.bf16.mxu0 %v1138_v15  ;;  %1037 = vmatpush3.bf16.msra.mxu1 %v1137_v16 }
  0x3a   :  { %1038 = vmatprep.subr.bf16.mxu1 %v1139_v17 }
  0x3c   :  { %1017 = vmatpush3.bf16.msra.mxu0 %v1140_v18 }
  0x3d   :  { %1018 = vmatprep.subr.bf16.mxu0 %v1142_v19  ;;  %1039 = vmatpush3.bf16.msra.mxu1 %v1141_v20 }
  0x3e   :  { %1040 = vmatprep.subr.bf16.mxu1 %v1143_v21 }
  0x40   :  { %1019 = vmatpush3.bf16.msra.mxu0 %v1144_v22 }
  0x41   :  { %1041 = vmatpush3.bf16.msra.mxu1 %v1145_v23  ;;  %1057 = vmatprep.subr.bf16.mxu0 %v1159_v26 }
  0x43   :  { %707 = vmatmul.mubr.bf16.vlgmr.msra.gmra.mrb[4].mxu0 %v71_v24 }
  0x44   :  { %747 = vmatmul.mubr.bf16.vlgmr.msra.gmra.mrb[4].mxu1 %v73_v25  ;;  %1058 = vmatpush3.bf16.msra.mxu0 %v1146_v27 }
  0x45   :  { %1059 = vmatprep.subr.bf16.mxu0 %v1159_v26  ;;  %1073 = vmatprep.mubr.msk.bf16.mxu0 %vm1160_vm0, %v1159_v26 }
  0x48   :  { %1060 = vmatpush3.bf16.msra.mxu0 %v1147_v28 }
  0x49   :  { %1061 = vmatprep.subr.bf16.mxu0 %v1159_v26 }
  0x4c   :  { %1062 = vmatpush3.bf16.msra.mxu0 %v1148_v29 }
  0x4d   :  { %1063 = vmatprep.subr.bf16.mxu0 %v1159_v26 }
  0x50   :  { %1064 = vmatpush3.bf16.msra.mxu0 %v1149_v30 }
  0x51   :  { %1065 = vmatprep.subr.bf16.mxu0 %v1159_v26 }
  0x54   :  { %1066 = vmatpush3.bf16.msra.mxu0 %v1150_v31 }
  0x55   :  { %1067 = vmatprep.subr.bf16.mxu0 %v1159_v26 }
  0x58   :  { %1068 = vmatpush3.bf16.msra.mxu0 %v1151_v32 }
  0x59   :  { %1069 = vmatprep.subr.bf16.mxu0 %v1159_v26 }
  0x5c   :  { %1070 = vmatpush3.bf16.msra.mxu0 %v1152_v33 }
  0x5d   :  { %1071 = vmatprep.subr.bf16.mxu0 %v1159_v26 }
  0x60   :  { %1072 = vmatpush3.bf16.msra.mxu0 %v1153_v34 }
  0xf6   :  { %v976_v35 = vpop.f32.mrb[0].mxu0 }
  0xf7   :  { %v977_v37 = vpop.f32.mrb[1].mxu0  ;;  %v998_v38 = vpop.f32.mrb[0].mxu1 }
  0xf8   :  { %v978_v39 = vadd.f32 %v977_v37, %v976_v35  ;;  %v979_v40 = vpop.f32.mrb[2].mxu0  ;;  %v999_v41 = vpop.f32.mrb[1].mxu1 }
  0xf9   :  { %v980_v42 = vpop.f32.mrb[3].mxu0  ;;  %v1000_v44 = vadd.f32 %v999_v41, %v998_v38  ;;  %v1001_v45 = vpop.f32.mrb[2].mxu1 }
  0xfa   :  { %v629_v43 = vadd.f32 %v978_v39, %v886_v36  ;;  %v1002_v46 = vpop.f32.mrb[3].mxu1 }
  0xfc   :  { %v669_v47 = vadd.f32 %v1000_v44, %v629_v43 }
 0x116   :  { %v1020_v48 = vpop.f32.mrb[4].mxu0 }
 0x117   :  { %v1021_v49 = vpop.f32.mrb[5].mxu0  ;;  %v1042_v50 = vpop.f32.mrb[4].mxu1 }
 0x118   :  { %v1022_v51 = vadd.f32 %v1021_v49, %v1020_v48  ;;  %v1023_v52 = vpop.f32.mrb[6].mxu0  ;;  %v1043_v53 = vpop.f32.mrb[5].mxu1 }
 0x119   :  { %v1024_v54 = vpop.f32.mrb[7].mxu0  ;;  %v1044_v56 = vadd.f32 %v1043_v53, %v1042_v50  ;;  %v1045_v57 = vpop.f32.mrb[6].mxu1 }
 0x11a   :  { %v709_v55 = vadd.f32 %v1022_v51, %v669_v47  ;;  %v1046_v58 = vpop.f32.mrb[7].mxu1 }
 0x11c   :  { %v749_v59 = vadd.f32 %v1044_v56, %v709_v55 }
 0x11e   :  { %v754_v60 = vmax.f32 %v749_v59, 0.0 }
 0x120   :  { %v755_v61 = vpack.c.bf16 %v754_v60, %v754_v60 }
 0x122   :  { %1074 = vmatmul.mubr.bf16.vlgmr.msra.gmra.mrb[8].mxu0 %v755_v61 }
 0x1f5   :  { %v861_v63 = vpop.f32.mrb[8].mxu0 }
 0x1f6   :  { %v862_v0 = vadd.f32 %v951_v62, %v861_v63  ;;  %v1075_v1 = vpop.f32.mrb[9].mxu0 }
 0x1f7   :  { %v864_v2 = vpop.f32.mrb[10].mxu0 }
 0x1f8   :  { %v1076_v3 = vpop.f32.mrb[11].mxu0  ;;  %v868_v4 = vsel %vm867_vm1, %v862_v0, -inf }
 0x1f9   :  { %869 = vmax.xlane.f32.xlu0 %v868_v4 }
 0x286   :  { %v870_v5 = vpop.xlane.xlu0 %869 }
 0x287   :  { %v871_v6 = vsub.f32 %v862_v0, %v870_v5 }
 0x289   :  { %v872_v7 = vmul.f32 1.442695, %v871_v6 }
 0x28b   :  { %1154 = vpow2.f32 %v872_v7 }
 0x295   :  { %v1155_v8 = vpop.eup %1154 }
 0x296   :  { %v874_v9 = vsel %vm867_vm1, %v1155_v8, 0.0 }
 0x297   :  { %875 = vadd.xlane.f32.xlu0 %v874_v9 }
 0x324   :  { %v876_v10 = vpop.xlane.xlu0 %875 }
 0x325   :  { %1156 = vlog2.f32 %v876_v10 }
 0x32f   :  { %v1157_v11 = vpop.eup %1156 }
 0x330   :  { %v878_v12 = vmul.f32 0.6931472, %v1157_v11 }
 0x332   :  { %v879_v13 = vsub.f32 %v871_v6, %v878_v12 }
 0x334   :  { %v880_v14 = vpack.c.bf16 %v879_v13, %v879_v13 }
 0x336   :  { %881 = vst [vmem:[%s1439_s5] sm:$0x1] %v880_v14 }

</bundles_post_ra>
